<compile_context>
chip_gen: v6e
topology: v6e:2x2x1
jax: 0.10.0
libtpu: 0.0.40
codegen_flags: <defaults>
</compile_context>

<pallas_src>
import functools
import math

import jax
import jax.numpy as jnp
from jax.experimental import pallas as pl
from jax.experimental.pallas import tpu as pltpu

LANE = 128


def _round_up(n, m=LANE):
    return ((n + m - 1) // m) * m


def _pad2d(a, rows, cols):
    pr, pc = rows - a.shape[0], cols - a.shape[1]
    if pr == 0 and pc == 0:
        return a
    return jnp.pad(a, ((0, pr), (0, pc)))


# ---------------------------------------------------------------------------
# Fused kernel: QKV proj + per-head attention (out-proj accumulated per head)
#               + ReLU MLP chain + fc1 + sigmoid.  One batch-tile per grid step.
# ---------------------------------------------------------------------------
def _fused_forward_kernel(TB, S, num_heads, head_dim, num_hidden, *refs):
    """refs = (x, w_qkv, b_qkv, w_o, b_o, [w_i, b_i]*num_hidden, fc_w, fc_b, out).

    x: (TB, S, E) bf16.  Weights: bf16, pre-transposed (in, out), lane-padded.
    Biases: f32 (1, out).  out: (TB, S, OUT_PAD) f32.
    """
    x_ref, wqkv_ref, bqkv_ref, wo_ref, bo_ref = refs[:5]
    o_ref = refs[-1]
    wb = refs[5:-1]                         # hidden (w, b) pairs, then fc1 (w, b)

    E = num_heads * head_dim
    N = TB * S

    # ---- fused Q/K/V projection over all rows of this batch tile ------------
    x2 = x_ref[...].reshape(N, E)                                         # bf16
    qkv = jnp.dot(x2, wqkv_ref[...],
                  preferred_element_type=jnp.float32) + bqkv_ref[...]     # (N, 3E) f32

    # ---- per-head attention; fold each head straight into the out-projection
    # (1/sqrt(head_dim) is already folded into the Q weights/bias.)
    attn_acc = None
    for h in range(num_heads):                                            # static unroll
        lo = h * head_dim
        qh = qkv[:, lo:lo + head_dim].astype(jnp.bfloat16).reshape(TB, S, head_dim)
        kh = qkv[:, E + lo:E + lo + head_dim].astype(jnp.bfloat16).reshape(TB, S, head_dim)
        vh = qkv[:, 2 * E + lo:2 * E + lo + head_dim].astype(jnp.bfloat16).reshape(TB, S, head_dim)

        s = jnp.einsum('bqd,bkd->bqk', qh, kh,
                       preferred_element_type=jnp.float32)                # (TB, S, S)
        s = s - jnp.max(s, axis=-1, keepdims=True)
        p = jnp.exp(s)
        p = p * pl.reciprocal(jnp.sum(p, axis=-1, keepdims=True), approx=True)

        ctx = jnp.einsum('bqk,bkd->bqd', p.astype(jnp.bfloat16), vh,
                         preferred_element_type=jnp.float32)              # (TB, S, d)

        # per-head slice of the out-projection weight (sublane slice, static)
        contrib = jnp.dot(ctx.reshape(N, head_dim).astype(jnp.bfloat16),
                          wo_ref[lo:lo + head_dim, :],
                          preferred_element_type=jnp.float32)             # (N, E_pad)
        attn_acc = contrib if attn_acc is None else attn_acc + contrib

    h_act = attn_acc + bo_ref[...]                                        # (N, E_pad) f32

    # ---- MultiLayerDNN: ReLU(Linear) chain (all widths lane-padded to 128) --
    for i in range(num_hidden):
        w = wb[2 * i]
        b = wb[2 * i + 1]
        h_act = jnp.maximum(
            jnp.dot(h_act.astype(jnp.bfloat16), w[...],
                    preferred_element_type=jnp.float32) + b[...], 0.0)

    # ---- fc1 + sigmoid, lane-dense (padded) store ----------------------------
    logits = jnp.dot(h_act.astype(jnp.bfloat16), wb[-2][...],
                     preferred_element_type=jnp.float32) + wb[-1][...]    # (N, OUT_PAD)
    o_ref[...] = jax.nn.sigmoid(logits).reshape(o_ref.shape).astype(o_ref.dtype)


# ---------------------------------------------------------------------------
# Parameter prep (trace-time): transpose / fuse / fold scale / lane-pad / cast
# ---------------------------------------------------------------------------
def prepare_params(params, *, num_heads):
    E = params["wq"].shape[0]
    head_dim = E // num_heads
    scale = 1.0 / math.sqrt(head_dim)

    # Fused, pre-transposed QKV weight (E, 3E); 1/sqrt(d) folded into the Q part.
    w_qkv = jnp.concatenate(
        [(params["wq"] * scale).T, params["wk"].T, params["wv"].T], axis=1
    ).astype(jnp.bfloat16)
    b_qkv = jnp.concatenate(
        [params["bq"] * scale, params["bk"], params["bv"]], axis=1
    ).astype(jnp.float32)

    # Out-projection: lane-pad columns to 128 (zero cols + zero bias).
    e_pad = _round_up(E)
    w_o = _pad2d(params["wo"].T, E, e_pad).astype(jnp.bfloat16)
    b_o = _pad2d(params["bo"], 1, e_pad).astype(jnp.float32)

    # Hidden chain: pad input rows to the previous padded width (rows added are
    # zero so padded lanes never leak), pad output columns to 128.
    hidden = []
    prev_pad = e_pad
    for (w, b) in params["hidden"]:
        out_w = w.shape[0]
        out_pad = _round_up(out_w)
        hidden.append((_pad2d(w.T, prev_pad, out_pad).astype(jnp.bfloat16),
                       _pad2d(b, 1, out_pad).astype(jnp.float32)))
        prev_pad = out_pad

    out_len = params["fc1_w"].shape[0]
    out_pad = _round_up(out_len)
    fc1_w = _pad2d(params["fc1_w"].T, prev_pad, out_pad).astype(jnp.bfloat16)
    fc1_b = _pad2d(params["fc1_b"], 1, out_pad).astype(jnp.float32)

    return dict(w_qkv=w_qkv, b_qkv=b_qkv, w_o=w_o, b_o=b_o,
                hidden=hidden, fc1_w=fc1_w, fc1_b=fc1_b)


# ---------------------------------------------------------------------------
# Tile / VMEM sizing (generation-aware: budgets sized for v7x's 64 MiB VMEM)
# ---------------------------------------------------------------------------
def _choose_batch_tile(B, S, E, out_pad):
    budget = 8 * 1024 * 1024  # dominant per-tile f32 terms kept well under v7x VMEM
    per_batch = 4 * (S * S + S * 3 * E + 3 * S * out_pad)
    tb = max(1, min(B, budget // max(per_batch, 1)))
    if B >= 2:                       # keep >=2 grid steps so v7x megacore has parallel work
        tb = min(tb, (B + 1) // 2)
    while B % tb:                    # keep tiles exact (no partial blocks)
        tb -= 1
    return tb


def _vmem_limit_bytes(flat, TB, S, E, out_pad):
    weight_bytes = sum(int(a.size) * a.dtype.itemsize for a in flat[1:])
    n = TB * S
    x_tile = n * E * 2                       # bf16, double-buffered
    out_tile = n * out_pad * 4               # f32, double-buffered
    interm = 4 * (n * 3 * E + 2 * TB * S * S + 3 * n * out_pad)
    need = 2 * weight_bytes + 2 * (x_tile + out_tile) + interm
    return int(min(max(2 * need, 16 * 1024 * 1024), 64 * 1024 * 1024))


def _resident_spec(shape):
    """Constant-index-map, single-buffered spec for weights/biases."""
    index_map = lambda i: (0,) * len(shape)
    try:
        return pl.BlockSpec(shape, index_map, pipeline_mode=pl.Buffered(1))
    except TypeError:  # older JAX without pipeline_mode on BlockSpec
        return pl.BlockSpec(shape, index_map)


# ---------------------------------------------------------------------------
# Full module forward (single fused pallas_call, batch-tiled grid)
# ---------------------------------------------------------------------------
@functools.partial(jax.jit, static_argnames=("num_heads",))
def forward_multihead_attention_dnn(x, params, *, num_heads):
    """x: (B, S, E). Returns (out, hidden) with hidden=None like the PyTorch module."""
    B, S, E = x.shape
    assert E % num_heads == 0
    head_dim = E // num_heads

    pp = prepare_params(params, num_heads=num_heads)
    out_len = params["fc1_w"].shape[0]
    out_pad = pp["fc1_w"].shape[1]
    num_hidden = len(pp["hidden"])

    TB = _choose_batch_tile(B, S, E, out_pad)
    grid = (pl.cdiv(B, TB),)

    # Stream activations in bf16 (halves HBM->VMEM bytes; matmuls are bf16 anyway).
    x_bf16 = x.astype(jnp.bfloat16)

    flat = [x_bf16, pp["w_qkv"], pp["b_qkv"], pp["w_o"], pp["b_o"]]
    for (w, b) in pp["hidden"]:
        flat.extend([w, b])
    flat.extend([pp["fc1_w"], pp["fc1_b"]])

    in_specs = [pl.BlockSpec((TB, S, E), lambda i: (i, 0, 0))]
    in_specs += [_resident_spec(a.shape) for a in flat[1:]]
    out_specs = pl.BlockSpec((TB, S, out_pad), lambda i: (i, 0, 0))

    kernel = functools.partial(
        _fused_forward_kernel, TB, S, num_heads, head_dim, num_hidden)

    out = pl.pallas_call(
        kernel,
        out_shape=jax.ShapeDtypeStruct((B, S, out_pad), jnp.float32),
        grid=grid,
        in_specs=in_specs,
        out_specs=out_specs,
        compiler_params=pltpu.CompilerParams(
            dimension_semantics=("parallel",),
            vmem_limit_bytes=_vmem_limit_bytes(flat, TB, S, E, out_pad)),
    )(*flat)

    # Slice off the lane padding; self.hidden is never assigned in PyTorch -> None.
    return out[..., :out_len].astype(x.dtype), None


# ---------------------------------------------------------------------------
# Pure-JAX reference (f32) for correctness checking
# ---------------------------------------------------------------------------
def reference_forward(x, params, *, num_heads):
    B, S, E = x.shape
    head_dim = E // num_heads
    scale = 1.0 / math.sqrt(head_dim)

    q = x @ params["wq"].T + params["bq"]
    k = x @ params["wk"].T + params["bk"]
    v = x @ params["wv"].T + params["bv"]

    def split_heads(t):
        return t.reshape(B, S, num_heads, head_dim).transpose(0, 2, 1, 3)

    q, k, v = split_heads(q), split_heads(k), split_heads(v)
    s = jnp.einsum('bhqd,bhkd->bhqk', q * scale, k)
    p = jax.nn.softmax(s, axis=-1)
    ctx = jnp.einsum('bhqk,bhkd->bhqd', p, v).transpose(0, 2, 1, 3).reshape(B, S, E)
    attn = ctx @ params["wo"].T + params["bo"]

    h = attn
    for (w, b) in params["hidden"]:
        h = jnp.maximum(h @ w.T + b, 0.0)
    return jax.nn.sigmoid(h @ params["fc1_w"].T + params["fc1_b"])


# ---------------------------------------------------------------------------
# Deterministic parameter init (synthetic; shapes follow the module __init__)
# ---------------------------------------------------------------------------
def init_params(key, input_len, hidden_units, out_len):
    E = input_len
    keys = jax.random.split(key, 16)
    ki = iter(keys)

    def lin(k, out_f, in_f):
        bound = 1.0 / math.sqrt(in_f)
        kw, kb = jax.random.split(k)
        w = jax.random.uniform(kw, (out_f, in_f), jnp.float32, -bound, bound)
        b = jax.random.uniform(kb, (1, out_f), jnp.float32, -bound, bound)
        return w, b

    # nn.MultiheadAttention: in_proj split into q/k/v, plus out_proj (all E x E).
    wq, bq = lin(next(ki), E, E)
    wk, bk = lin(next(ki), E, E)
    wv, bv = lin(next(ki), E, E)
    wo, bo = lin(next(ki), E, E)

    # MultiLayerDNN: encoder Linear(E -> hidden[0]), then hidden[i-1] -> hidden[i].
    hidden = []
    prev = E
    for hdim in hidden_units:
        hidden.append(lin(next(ki), hdim, prev))
        prev = hdim

    # fc1: Linear(hidden[-1] -> out_len)
    fc1_w, fc1_b = lin(next(ki), out_len, hidden_units[-1])

    # TODO(synk): `self.feedforward` Linear exists in __init__ but is unused in
    # forward(), so its parameters are intentionally not instantiated here.
    return dict(wq=wq, wk=wk, wv=wv, bq=bq, bk=bk, bv=bv, wo=wo, bo=bo,
                hidden=hidden, fc1_w=fc1_w, fc1_b=fc1_b)


if __name__ == "__main__":
    # Small shapes consistent with the module's forward (4 batch tiles -> grid of 2).
    B, S = 4, 8
    input_len = 32            # embed_dim of the MHA
    hidden_units = [64, 32]
    out_len = 16
    num_heads = 2             # activate_func := ReLU

    key = jax.random.PRNGKey(0)
    kx, kp = jax.random.split(key)
    x = jax.random.normal(kx, (B, S, input_len), jnp.float32)
    params = init_params(kp, input_len, hidden_units, out_len)

    out, hidden = forward_multihead_attention_dnn(x, params, num_heads=num_heads)
    out = jax.block_until_ready(out)

    assert out.shape == (B, S, out_len), out.shape
    assert hidden is None
    assert bool(jnp.all(jnp.isfinite(out)))
    assert bool(jnp.all((out >= 0.0) & (out <= 1.0)))   # sigmoid output range

    # Numerical check against a pure-JAX f32 reference (loose tol: bf16 MXU operands).
    ref = reference_forward(x, params, num_heads=num_heads)
    assert bool(jnp.allclose(out, ref, atol=5e-2)), float(jnp.max(jnp.abs(out - ref)))

    print("KERNEL_OK")
</pallas_src>

<mosaic_0001>
module attributes {stable_mosaic.version = 11 : i64} {
  func.func @_fused_forward_kernel(%arg0: i32, %arg1: memref<2x8x32xbf16, #tpu.memory_space<vmem>>, %arg2: memref<32x96xbf16, #tpu.memory_space<vmem>>, %arg3: memref<1x96xf32, #tpu.memory_space<vmem>>, %arg4: memref<32x128xbf16, #tpu.memory_space<vmem>>, %arg5: memref<1x128xf32, #tpu.memory_space<vmem>>, %arg6: memref<128x128xbf16, #tpu.memory_space<vmem>>, %arg7: memref<1x128xf32, #tpu.memory_space<vmem>>, %arg8: memref<128x128xbf16, #tpu.memory_space<vmem>>, %arg9: memref<1x128xf32, #tpu.memory_space<vmem>>, %arg10: memref<128x128xbf16, #tpu.memory_space<vmem>>, %arg11: memref<1x128xf32, #tpu.memory_space<vmem>>, %arg12: memref<2x8x128xf32, #tpu.memory_space<vmem>>) attributes {dimension_semantics = [#tpu.dimension_semantics<parallel>], iteration_bounds = array<i64: 2>, scalar_prefetch = 0 : i64, scratch_operands = 0 : i64, tpu.core_type = #tpu.core_type<tc>, window_params = [{transform_indices = @transform_0, window_bounds = array<i64: 2, 8, 32>}, {pipeline_mode = #tpu.pipeline_mode<synchronous>, transform_indices = @transform_1, window_bounds = array<i64: 32, 96>}, {pipeline_mode = #tpu.pipeline_mode<synchronous>, transform_indices = @transform_2, window_bounds = array<i64: 1, 96>}, {pipeline_mode = #tpu.pipeline_mode<synchronous>, transform_indices = @transform_3, window_bounds = array<i64: 32, 128>}, {pipeline_mode = #tpu.pipeline_mode<synchronous>, transform_indices = @transform_4, window_bounds = array<i64: 1, 128>}, {pipeline_mode = #tpu.pipeline_mode<synchronous>, transform_indices = @transform_5, window_bounds = array<i64: 128, 128>}, {pipeline_mode = #tpu.pipeline_mode<synchronous>, transform_indices = @transform_6, window_bounds = array<i64: 1, 128>}, {pipeline_mode = #tpu.pipeline_mode<synchronous>, transform_indices = @transform_7, window_bounds = array<i64: 128, 128>}, {pipeline_mode = #tpu.pipeline_mode<synchronous>, transform_indices = @transform_8, window_bounds = array<i64: 1, 128>}, {pipeline_mode = #tpu.pipeline_mode<synchronous>, transform_indices = @transform_9, window_bounds = array<i64: 128, 128>}, {pipeline_mode = #tpu.pipeline_mode<synchronous>, transform_indices = @transform_10, window_bounds = array<i64: 1, 128>}, {transform_indices = @transform_11, window_bounds = array<i64: 2, 8, 128>}]} {
    %c0 = arith.constant 0 : index
    %c0_0 = arith.constant 0 : index
    %c0_1 = arith.constant 0 : index
    %0 = vector.load %arg1[%c0, %c0_0, %c0_1] : memref<2x8x32xbf16, #tpu.memory_space<vmem>>, vector<2x8x32xbf16>
    %1 = vector.shape_cast %0 : vector<2x8x32xbf16> to vector<16x32xbf16>
    %c0_2 = arith.constant 0 : index
    %c0_3 = arith.constant 0 : index
    %2 = vector.load %arg2[%c0_2, %c0_3] : memref<32x96xbf16, #tpu.memory_space<vmem>>, vector<32x96xbf16>
    %cst = arith.constant dense<0.000000e+00> : vector<16x96xf32>
    %3 = tpu.matmul %1, %2, %cst {dimension_numbers = #tpu.dot_dimension_numbers<[1], [0], [0], [1], [0, 0, 1, 1], [], []>} : vector<16x32xbf16>, vector<32x96xbf16>, vector<16x96xf32> -> vector<16x96xf32>
    %c0_4 = arith.constant 0 : index
    %c0_5 = arith.constant 0 : index
    %4 = vector.load %arg3[%c0_4, %c0_5] : memref<1x96xf32, #tpu.memory_space<vmem>>, vector<1x96xf32>
    %5 = vector.broadcast %4 : vector<1x96xf32> to vector<16x96xf32>
    %6 = arith.addf %3, %5 : vector<16x96xf32>
    %7 = vector.extract_strided_slice %6 {offsets = [0, 0], sizes = [16, 16], strides = [1, 1]} : vector<16x96xf32> to vector<16x16xf32>
    %8 = arith.truncf %7 : vector<16x16xf32> to vector<16x16xbf16>
    %9 = vector.shape_cast %8 : vector<16x16xbf16> to vector<2x8x16xbf16>
    %10 = vector.extract_strided_slice %6 {offsets = [0, 32], sizes = [16, 16], strides = [1, 1]} : vector<16x96xf32> to vector<16x16xf32>
    %11 = arith.truncf %10 : vector<16x16xf32> to vector<16x16xbf16>
    %12 = vector.shape_cast %11 : vector<16x16xbf16> to vector<2x8x16xbf16>
    %13 = vector.extract_strided_slice %6 {offsets = [0, 64], sizes = [16, 16], strides = [1, 1]} : vector<16x96xf32> to vector<16x16xf32>
    %14 = arith.truncf %13 : vector<16x16xf32> to vector<16x16xbf16>
    %15 = vector.shape_cast %14 : vector<16x16xbf16> to vector<2x8x16xbf16>
    "tpu.trace_start"() <{level = 10 : i32, message = "bqd,bkd->bqk"}> : () -> ()
    %cst_6 = arith.constant dense<0.000000e+00> : vector<2x8x8xf32>
    %16 = tpu.matmul %9, %12, %cst_6 {dimension_numbers = #tpu.dot_dimension_numbers<[2], [2], [1], [1], [0, 0, 0, 1, 1, 1], [0], [0]>} : vector<2x8x16xbf16>, vector<2x8x16xbf16>, vector<2x8x8xf32> -> vector<2x8x8xf32>
    "tpu.trace_stop"() : () -> ()
    %cst_7 = arith.constant dense<0xFF800000> : vector<2x8xf32>
    %17 = vector.multi_reduction <maximumf>, %16, %cst_7 [2] : vector<2x8x8xf32> to vector<2x8xf32>
    %18 = vector.shape_cast %17 : vector<2x8xf32> to vector<2x8x1xf32>
    %19 = vector.broadcast %18 : vector<2x8x1xf32> to vector<2x8x8xf32>
    %20 = arith.subf %16, %19 : vector<2x8x8xf32>
    %21 = math.exp %20 : vector<2x8x8xf32>
    %cst_8 = arith.constant dense<0.000000e+00> : vector<2x8xf32>
    %22 = vector.multi_reduction <add>, %21, %cst_8 [2] : vector<2x8x8xf32> to vector<2x8xf32>
    %23 = vector.shape_cast %22 : vector<2x8xf32> to vector<2x8x1xf32>
    %24 = tpu.reciprocal %23 {approx = true} : vector<2x8x1xf32> -> vector<2x8x1xf32>
    %25 = vector.broadcast %24 : vector<2x8x1xf32> to vector<2x8x8xf32>
    %26 = arith.mulf %21, %25 : vector<2x8x8xf32>
    %27 = arith.truncf %26 : vector<2x8x8xf32> to vector<2x8x8xbf16>
    "tpu.trace_start"() <{level = 10 : i32, message = "bqk,bkd->bqd"}> : () -> ()
    %cst_9 = arith.constant dense<0.000000e+00> : vector<2x8x16xf32>
    %28 = tpu.matmul %27, %15, %cst_9 {dimension_numbers = #tpu.dot_dimension_numbers<[2], [1], [1], [2], [0, 0, 0, 1, 1, 2], [0], [0]>} : vector<2x8x8xbf16>, vector<2x8x16xbf16>, vector<2x8x16xf32> -> vector<2x8x16xf32>
    "tpu.trace_stop"() : () -> ()
    %29 = vector.shape_cast %28 : vector<2x8x16xf32> to vector<16x16xf32>
    %30 = arith.truncf %29 : vector<16x16xf32> to vector<16x16xbf16>
    %c0_10 = arith.constant 0 : index
    %c0_11 = arith.constant 0 : index
    %31 = vector.load %arg4[%c0_10, %c0_11] : memref<32x128xbf16, #tpu.memory_space<vmem>>, vector<16x128xbf16>
    %cst_12 = arith.constant dense<0.000000e+00> : vector<16x128xf32>
    %32 = tpu.matmul %30, %31, %cst_12 {dimension_numbers = #tpu.dot_dimension_numbers<[1], [0], [0], [1], [0, 0, 1, 1], [], []>} : vector<16x16xbf16>, vector<16x128xbf16>, vector<16x128xf32> -> vector<16x128xf32>
    %33 = vector.extract_strided_slice %6 {offsets = [0, 16], sizes = [16, 16], strides = [1, 1]} : vector<16x96xf32> to vector<16x16xf32>
    %34 = arith.truncf %33 : vector<16x16xf32> to vector<16x16xbf16>
    %35 = vector.shape_cast %34 : vector<16x16xbf16> to vector<2x8x16xbf16>
    %36 = vector.extract_strided_slice %6 {offsets = [0, 48], sizes = [16, 16], strides = [1, 1]} : vector<16x96xf32> to vector<16x16xf32>
    %37 = arith.truncf %36 : vector<16x16xf32> to vector<16x16xbf16>
    %38 = vector.shape_cast %37 : vector<16x16xbf16> to vector<2x8x16xbf16>
    %39 = vector.extract_strided_slice %6 {offsets = [0, 80], sizes = [16, 16], strides = [1, 1]} : vector<16x96xf32> to vector<16x16xf32>
    %40 = arith.truncf %39 : vector<16x16xf32> to vector<16x16xbf16>
    %41 = vector.shape_cast %40 : vector<16x16xbf16> to vector<2x8x16xbf16>
    "tpu.trace_start"() <{level = 10 : i32, message = "bqd,bkd->bqk"}> : () -> ()
    %cst_13 = arith.constant dense<0.000000e+00> : vector<2x8x8xf32>
    %42 = tpu.matmul %35, %38, %cst_13 {dimension_numbers = #tpu.dot_dimension_numbers<[2], [2], [1], [1], [0, 0, 0, 1, 1, 1], [0], [0]>} : vector<2x8x16xbf16>, vector<2x8x16xbf16>, vector<2x8x8xf32> -> vector<2x8x8xf32>
    "tpu.trace_stop"() : () -> ()
    %cst_14 = arith.constant dense<0xFF800000> : vector<2x8xf32>
    %43 = vector.multi_reduction <maximumf>, %42, %cst_14 [2] : vector<2x8x8xf32> to vector<2x8xf32>
    %44 = vector.shape_cast %43 : vector<2x8xf32> to vector<2x8x1xf32>
    %45 = vector.broadcast %44 : vector<2x8x1xf32> to vector<2x8x8xf32>
    %46 = arith.subf %42, %45 : vector<2x8x8xf32>
    %47 = math.exp %46 : vector<2x8x8xf32>
    %cst_15 = arith.constant dense<0.000000e+00> : vector<2x8xf32>
    %48 = vector.multi_reduction <add>, %47, %cst_15 [2] : vector<2x8x8xf32> to vector<2x8xf32>
    %49 = vector.shape_cast %48 : vector<2x8xf32> to vector<2x8x1xf32>
    %50 = tpu.reciprocal %49 {approx = true} : vector<2x8x1xf32> -> vector<2x8x1xf32>
    %51 = vector.broadcast %50 : vector<2x8x1xf32> to vector<2x8x8xf32>
    %52 = arith.mulf %47, %51 : vector<2x8x8xf32>
    %53 = arith.truncf %52 : vector<2x8x8xf32> to vector<2x8x8xbf16>
    "tpu.trace_start"() <{level = 10 : i32, message = "bqk,bkd->bqd"}> : () -> ()
    %cst_16 = arith.constant dense<0.000000e+00> : vector<2x8x16xf32>
    %54 = tpu.matmul %53, %41, %cst_16 {dimension_numbers = #tpu.dot_dimension_numbers<[2], [1], [1], [2], [0, 0, 0, 1, 1, 2], [0], [0]>} : vector<2x8x8xbf16>, vector<2x8x16xbf16>, vector<2x8x16xf32> -> vector<2x8x16xf32>
    "tpu.trace_stop"() : () -> ()
    %55 = vector.shape_cast %54 : vector<2x8x16xf32> to vector<16x16xf32>
    %56 = arith.truncf %55 : vector<16x16xf32> to vector<16x16xbf16>
    %c16 = arith.constant 16 : index
    %c0_17 = arith.constant 0 : index
    %57 = vector.load %arg4[%c16, %c0_17] : memref<32x128xbf16, #tpu.memory_space<vmem>>, vector<16x128xbf16>
    %cst_18 = arith.constant dense<0.000000e+00> : vector<16x128xf32>
    %58 = tpu.matmul %56, %57, %cst_18 {dimension_numbers = #tpu.dot_dimension_numbers<[1], [0], [0], [1], [0, 0, 1, 1], [], []>} : vector<16x16xbf16>, vector<16x128xbf16>, vector<16x128xf32> -> vector<16x128xf32>
    %59 = arith.addf %32, %58 : vector<16x128xf32>
    %c0_19 = arith.constant 0 : index
    %c0_20 = arith.constant 0 : index
    %60 = vector.load %arg5[%c0_19, %c0_20] : memref<1x128xf32, #tpu.memory_space<vmem>>, vector<1x128xf32>
    %61 = vector.broadcast %60 : vector<1x128xf32> to vector<16x128xf32>
    %62 = arith.addf %59, %61 : vector<16x128xf32>
    %63 = arith.truncf %62 : vector<16x128xf32> to vector<16x128xbf16>
    %c0_21 = arith.constant 0 : index
    %c0_22 = arith.constant 0 : index
    %64 = vector.load %arg6[%c0_21, %c0_22] : memref<128x128xbf16, #tpu.memory_space<vmem>>, vector<128x128xbf16>
    %cst_23 = arith.constant dense<0.000000e+00> : vector<16x128xf32>
    %65 = tpu.matmul %63, %64, %cst_23 {dimension_numbers = #tpu.dot_dimension_numbers<[1], [0], [0], [1], [0, 0, 1, 1], [], []>} : vector<16x128xbf16>, vector<128x128xbf16>, vector<16x128xf32> -> vector<16x128xf32>
    %c0_24 = arith.constant 0 : index
    %c0_25 = arith.constant 0 : index
    %66 = vector.load %arg7[%c0_24, %c0_25] : memref<1x128xf32, #tpu.memory_space<vmem>>, vector<1x128xf32>
    %67 = vector.broadcast %66 : vector<1x128xf32> to vector<16x128xf32>
    %68 = arith.addf %65, %67 : vector<16x128xf32>
    %cst_26 = arith.constant 0.000000e+00 : f32
    %69 = vector.broadcast %cst_26 : f32 to vector<16x128xf32>
    %70 = arith.maximumf %68, %69 : vector<16x128xf32>
    %71 = arith.truncf %70 : vector<16x128xf32> to vector<16x128xbf16>
    %c0_27 = arith.constant 0 : index
    %c0_28 = arith.constant 0 : index
    %72 = vector.load %arg8[%c0_27, %c0_28] : memref<128x128xbf16, #tpu.memory_space<vmem>>, vector<128x128xbf16>
    %cst_29 = arith.constant dense<0.000000e+00> : vector<16x128xf32>
    %73 = tpu.matmul %71, %72, %cst_29 {dimension_numbers = #tpu.dot_dimension_numbers<[1], [0], [0], [1], [0, 0, 1, 1], [], []>} : vector<16x128xbf16>, vector<128x128xbf16>, vector<16x128xf32> -> vector<16x128xf32>
    %c0_30 = arith.constant 0 : index
    %c0_31 = arith.constant 0 : index
    %74 = vector.load %arg9[%c0_30, %c0_31] : memref<1x128xf32, #tpu.memory_space<vmem>>, vector<1x128xf32>
    %75 = vector.broadcast %74 : vector<1x128xf32> to vector<16x128xf32>
    %76 = arith.addf %73, %75 : vector<16x128xf32>
    %cst_32 = arith.constant 0.000000e+00 : f32
    %77 = vector.broadcast %cst_32 : f32 to vector<16x128xf32>
    %78 = arith.maximumf %76, %77 : vector<16x128xf32>
    %79 = arith.truncf %78 : vector<16x128xf32> to vector<16x128xbf16>
    %c0_33 = arith.constant 0 : index
    %c0_34 = arith.constant 0 : index
    %80 = vector.load %arg10[%c0_33, %c0_34] : memref<128x128xbf16, #tpu.memory_space<vmem>>, vector<128x128xbf16>
    %cst_35 = arith.constant dense<0.000000e+00> : vector<16x128xf32>
    %81 = tpu.matmul %79, %80, %cst_35 {dimension_numbers = #tpu.dot_dimension_numbers<[1], [0], [0], [1], [0, 0, 1, 1], [], []>} : vector<16x128xbf16>, vector<128x128xbf16>, vector<16x128xf32> -> vector<16x128xf32>
    %c0_36 = arith.constant 0 : index
    %c0_37 = arith.constant 0 : index
    %82 = vector.load %arg11[%c0_36, %c0_37] : memref<1x128xf32, #tpu.memory_space<vmem>>, vector<1x128xf32>
    %83 = vector.broadcast %82 : vector<1x128xf32> to vector<16x128xf32>
    %84 = arith.addf %81, %83 : vector<16x128xf32>
    %85 = arith.negf %84 : vector<16x128xf32>
    %86 = math.exp %85 : vector<16x128xf32>
    %cst_38 = arith.constant 1.000000e+00 : f32
    %87 = vector.broadcast %cst_38 : f32 to vector<16x128xf32>
    %88 = arith.addf %87, %86 : vector<16x128xf32>
    %89 = arith.divf %87, %88 : vector<16x128xf32>
    %90 = vector.shape_cast %89 : vector<16x128xf32> to vector<2x8x128xf32>
    %c0_39 = arith.constant 0 : index
    %c0_40 = arith.constant 0 : index
    %c0_41 = arith.constant 0 : index
    %91 = vector.load %arg12[%c0_39, %c0_40, %c0_41] : memref<2x8x128xf32, #tpu.memory_space<vmem>>, vector<2x8x128xf32>
    tpu.vector_store %arg12[%c0_39, %c0_40, %c0_41], %90 {strides = array<i32>} : memref<2x8x128xf32, #tpu.memory_space<vmem>>, vector<2x8x128xf32>,
    return
  }
  func.func @transform_0(%arg0: i32) -> (i32, i32, i32) {
    %c0_i32 = arith.constant 0 : i32
    %c0_i32_0 = arith.constant 0 : i32
    %c0_i32_1 = arith.constant 0 : i32
    return %arg0, %c0_i32, %c0_i32_0 : i32, i32, i32
  }
  func.func @transform_1(%arg0: i32) -> (i32, i32) {
    %c0_i32 = arith.constant 0 : i32
    %c0_i32_0 = arith.constant 0 : i32
    %c0_i32_1 = arith.constant 0 : i32
    return %c0_i32, %c0_i32_0 : i32, i32
  }
  func.func @transform_2(%arg0: i32) -> (i32, i32) {
    %c0_i32 = arith.constant 0 : i32
    %c0_i32_0 = arith.constant 0 : i32
    %c0_i32_1 = arith.constant 0 : i32
    return %c0_i32, %c0_i32_0 : i32, i32
  }
  func.func @transform_3(%arg0: i32) -> (i32, i32) {
    %c0_i32 = arith.constant 0 : i32
    %c0_i32_0 = arith.constant 0 : i32
    %c0_i32_1 = arith.constant 0 : i32
    return %c0_i32, %c0_i32_0 : i32, i32
  }
  func.func @transform_4(%arg0: i32) -> (i32, i32) {
    %c0_i32 = arith.constant 0 : i32
    %c0_i32_0 = arith.constant 0 : i32
    %c0_i32_1 = arith.constant 0 : i32
    return %c0_i32, %c0_i32_0 : i32, i32
  }
  func.func @transform_5(%arg0: i32) -> (i32, i32) {
    %c0_i32 = arith.constant 0 : i32
    %c0_i32_0 = arith.constant 0 : i32
    %c0_i32_1 = arith.constant 0 : i32
    return %c0_i32, %c0_i32_0 : i32, i32
  }
  func.func @transform_6(%arg0: i32) -> (i32, i32) {
    %c0_i32 = arith.constant 0 : i32
    %c0_i32_0 = arith.constant 0 : i32
    %c0_i32_1 = arith.constant 0 : i32
    return %c0_i32, %c0_i32_0 : i32, i32
  }
  func.func @transform_7(%arg0: i32) -> (i32, i32) {
    %c0_i32 = arith.constant 0 : i32
    %c0_i32_0 = arith.constant 0 : i32
    %c0_i32_1 = arith.constant 0 : i32
    return %c0_i32, %c0_i32_0 : i32, i32
  }
  func.func @transform_8(%arg0: i32) -> (i32, i32) {
    %c0_i32 = arith.constant 0 : i32
    %c0_i32_0 = arith.constant 0 : i32
    %c0_i32_1 = arith.constant 0 : i32
    return %c0_i32, %c0_i32_0 : i32, i32
  }
  func.func @transform_9(%arg0: i32) -> (i32, i32) {
    %c0_i32 = arith.constant 0 : i32
    %c0_i32_0 = arith.constant 0 : i32
    %c0_i32_1 = arith.constant 0 : i32
    return %c0_i32, %c0_i32_0 : i32, i32
  }
  func.func @transform_10(%arg0: i32) -> (i32, i32) {
    %c0_i32 = arith.constant 0 : i32
    %c0_i32_0 = arith.constant 0 : i32
    %c0_i32_1 = arith.constant 0 : i32
    return %c0_i32, %c0_i32_0 : i32, i32
  }
  func.func @transform_11(%arg0: i32) -> (i32, i32, i32) {
    %c0_i32 = arith.constant 0 : i32
    %c0_i32_0 = arith.constant 0 : i32
    %c0_i32_1 = arith.constant 0 : i32
    return %arg0, %c0_i32, %c0_i32_0 : i32, i32, i32
  }
}

</mosaic_0001>

<bundles_post_ra>
// kernel: forward_multihead_attention_dnn.1
= control target key start
LH: loop header
LB: loop body
LE: loop exit
PB: predicated region body
PF: predicated region fallthrough
CT: control target
= control target key end

     0   :  { %s2241_s0 = inlined_call_operand.vmem [shape: bf16[4,8,32], index: 0, kind: input, shape index: {}]   ;;  %s2242_s1 = inlined_call_operand.vmem [shape: bf16[32,96], index: 1, kind: input, shape index: {}]   ;;  %s2243_s2 = inlined_call_operand.vmem [shape: f32[1,96], index: 2, kind: input, shape index: {}]   ;;  %s2244_s3 = inlined_call_operand.vmem [shape: bf16[32,128], index: 3, kind: input, shape index: {}]   ;;  %s2245_s4 = inlined_call_operand.vmem [shape: f32[1,128], index: 4, kind: input, shape index: {}]   ;;  %s2246_s5 = inlined_call_operand.vmem [shape: bf16[128,128], index: 5, kind: input, shape index: {}]   ;;  %s2247_s6 = inlined_call_operand.vmem [shape: f32[1,128], index: 6, kind: input, shape index: {}]   ;;  %s2248_s7 = inlined_call_operand.vmem [shape: bf16[128,128], index: 7, kind: input, shape index: {}]   ;;  %s2249_s8 = inlined_call_operand.vmem [shape: f32[1,128], index: 8, kind: input, shape index: {}]   ;;  %s2250_s9 = inlined_call_operand.vmem [shape: bf16[128,128], index: 9, kind: input, shape index: {}]   ;;  %s2251_s10 = inlined_call_operand.vmem [shape: f32[1,128], index: 10, kind: input, shape index: {}]   ;;  %s2252_s11 = inlined_call_operand.hbm [shape: f32[4,8,128], index: 11, kind: output, shape index: {}]  }
   0x1   :  { %2253 = sst [smem:[#allocation5_spill]] %s2241_s0 }
   0x2   :  { %16 = vsyncpa [#allocation3], 0 }
   0x3   :  { %18 = vsyncpa [#allocation3 + $0x1], 0  ;;  %s1932_s17 = smov 0   ;;  %s1934_s18 = smov 0  }
   0x4   :  { %s1936_s19 = smov 0   ;;  %s1938_s20 = smov 0  }
   0x5 LB: > { %s1953_s21 = sadd.s32 4294967295, %s1860_s20   ;;  %s1457_s22 = sadd.s32 4294967294, %s1860_s20   ;;  %s1860_s20 = sphi %s1938_s20, %s2260_s20   ;;  %s1856_s19 = sphi %s1936_s19, %s2259_s19   ;;  %s1852_s18 = sphi %s1934_s18, %s2258_s18   ;;  %s1848_s17 = sphi %s1932_s17, %s2257_s17  }
   0x6   : > { %s1957_s23 = sadd.s32 1, %s1860_s20   ;;  %s267_s24 = sadd.s32 1, %s1856_s19 }
   0x7   : > { %s264_s25 = ssub.s32 %s1860_s20, %s1957_s23  ;;  %p277_p0 = scmp.ne.s32.totalorder %s1856_s19, %s1852_s18 }
   0x8   : > { %p265_p1 = scmp.eq.s32.totalorder %s264_s25, 0  ;;  %p278_p2 = scmp.eq.s32.totalorder %s1953_s21, 1 }
   0x9   : > { %p283_p3 = scmp.ne.s32.totalorder %s1852_s18, %s1848_s17  ;;  %p284_p4 = scmp.eq.s32.totalorder %s1457_s22, 1 }
   0xa   : > { %s1968_s26 = scalar_select %p265_p1, %s1856_s19, %s267_s24  }
   0xb   : > { %p1970_p5 = por %p278_p2, %p277_p0  ;;  %p1974_p6 = por %p284_p4, %p283_p3 }
   0xc   : > { %p1460_p7 = scmp.ge.s32.totalorder %s1860_s20, 1  ;;  %p341_p8 = scmp.lt.s32.totalorder %s1860_s20, 3 }
   0xe   : > { %p342_p9 = pnand %p1460_p7, %p341_p8 }
   0xf   : > { %s1462_s14 = sshll.u32 (!%p342_p9), %s1953_s21, 1  ;;  %s2256_s0 = sld [smem:[#allocation5_spill]] (!%p342_p9) }
  0x10   : > { %345 = sbr.rel (%p342_p9) target bundleno = 2429 (0x97d), region = 64  ;;  %p382_p10 = scmp.lt.s32.totalorder (!%p342_p9), %s1462_s14, 3 }
  0x11   : > { %s1864_s30 = smov (!%p342_p9), 96   ;;  %s1865_s12 = smov (!%p342_p9), 64  }
  0x12   : > { %s1866_s13 = smov (!%p342_p9), 80   ;;  %s378_s16 = sand.u32 (!%p342_p9), 1, %s1852_s18  }
  0x13   : > { %s1461_s22 = sshll.u32 (!%p342_p9), %s378_s16, 4 }
  0x14   : > { %s380_s25 = scalar_lea.vmem (!%p342_p9), [#allocation2], %s1461_s22 }
  0x15   : > { %v1747_v0 = vld [vmem:[%s2242_s1 + $0x8] sm:$0xff]   ;;  %v1862_v1 = vmov 0.0   ;;  %v1748_v2 = vld [vmem:[%s2242_s1] sm:$0xff]   ;;  %vm1863_vm0 = vmmov 0   ;;  %s2262_s14 = smov (!%p382_p10, %s1462_s14), 3  ;;  %vm419_vm1 = vcmask 261120  }
  0x16   : > { %1571 = vmatprep.subr.bf16.mxu0 %v1862_v1  ;;  %1591 = vmatprep.subr.bf16.mxu1 %v1862_v1  ;;  %s1463_s15 = sshll.u32 %s2262_s14, 2  ;;  %v1464_v4 = vld [vmem:[%s2243_s2] ss:$0 sm:$0xff]  ;;  %vm472_vm2 = vcmask 130048   ;;  %vm567_vm3 = vcmask 64512   ;;  %vm597_vm4 = vcmask 1043456  }
  0x17   : > { %1572 = vmatpush3.bf16.msra.mxu0 %v1747_v0  ;;  %1575 = vmatprep.mubr.msk.bf16.mxu0 %vm1863_vm0, %v1862_v1  ;;  %s385_s24 = scalar_lea.vmem %s2256_s0, %s1463_s15  ;;  %s1867_s14 = smov 112  }
  0x18   : > { %1573 = vmatprep.subr.bf16.mxu0 %v1862_v1  ;;  %1593 = vmatprep.mubr.msk.bf16.mxu1 %vm1863_vm0, %v1862_v1  ;;  %v1749_v3 = vld [vmem:[%s385_s24] sm:$0xff]   ;;  %s1868_s15 = smov 48   ;;  %s1520_s24 = sshll.u32 %s1953_s21, 8 }
  0x19   : > { %s1395_s29 = sshll.u32 %s380_s25, 4  ;;  %s1869_s21 = smov [#allocation2]   ;;  %s2199_s29 = int_to_ptr.vmem [resolvable:$true] %s1395_s29 }
  0x1a   : > { %s1804_s22 = sshll.u32 %s1869_s21, 4  ;;  %s1805_s22 = int_to_ptr.vmem [resolvable:$false] %s1804_s22 }
  0x1b   : > { %1574 = vmatpush3.bf16.msra.mxu0 %v1748_v2  ;;  %p1807_p0 = scmp.lt.s32.totalorder %s2199_s29, %s1805_s22 }
  0x1c   : > { %1579 = vmatprep.subr.bf16.mxu0 %v1862_v1 }
  0x1e   : > { %1576 = vmatmul.mubr.msk.bf16.vlgmr.msra.gmra.mxu0 %vm419_vm1, %v1749_v3 }
  0x1f   : > { %1581 = vmatprep.mubr.msk.bf16.mxu0 %vm1863_vm0, %v1862_v1 }
  0xde   : > { %v457_v5 = vpop.f32.mrf.mxu0 }
  0xdf   : > { %v458_v6 = vadd.f32 %v1464_v4, %v457_v5 }
  0xe0   : > { %v1577_v7 = vpop.f32.mrf.mxu0 }
  0xe1   : > { %v2003_v8 = vpack.c.bf16 %v458_v6, %v458_v6 }
  0xe2   : > { %v460_v9 = vpop.f32.mrf.mxu0 }
  0xe3   : > { %v461_v10 = vadd.f32 %v1464_v4, %v460_v9  ;;  %470 = vrot.lane.b32.xlu0 %v2003_v8, %s1864_s30 }
  0xe4   : > { %v1578_v11 = vpop.f32.mrf.mxu0 }
  0xe5   : > { %v2006_v12 = vpack.c.bf16 %v461_v10, %v461_v10 }
  0xe7   : > { %519 = vrot.lane.b32.xlu0 %v2006_v12, %s1864_s30  ;;  %s1806_s30 = scalar_lea.vmem %s1805_s22, 512 }
 0x155   : > { %v471_v13 = vpop.permute.xlu0 %470 }
 0x156   : > { %v477_v14 = vsel %vm472_vm2, %v471_v13, 0 }
 0x157   : > { %1580 = vmatpush3.bf16.xpose.msra.mxu0 %v477_v14 }
 0x158   : > { %1585 = vmatprep.subr.bf16.mxu0 %v1862_v1 }
 0x159   : > { %v520_v15 = vpop.permute.xlu0 %519 }
 0x15a   : > { %v525_v16 = vsel %vm472_vm2, %v520_v15, 0 }
 0x15e   : > { %1582 = vmatmul.mubr.msk.bf16.vlgmr.msra.gmra.mxu0 %vm472_vm2, %v2003_v8 }
 0x15f   : > { %1586 = vmatpush3.bf16.xpose.msra.mxu0 %v525_v16  ;;  %1587 = vmatprep.mubr.msk.bf16.mxu0 %vm1863_vm0, %v1862_v1 }
 0x160   : > { %1597 = vmatprep.subr.bf16.mxu0 %v1862_v1 }
 0x166   : > { %1588 = vmatmul.mubr.msk.bf16.vlgmr.msra.gmra.mxu0 %vm472_vm2, %v2006_v12 }
 0x167   : > { %1599 = vmatprep.mubr.msk.bf16.mxu0 %vm1863_vm0, %v1862_v1 }
 0x21e   : > { %v513_v17 = vpop.f32.mrf.mxu0 }
 0x21f   : > { %v568_v18 = vsel %vm567_vm3, %v513_v17, -inf }
 0x220   : > { %569 = vmax.xlane.f32.xlu1 %v568_v18  ;;  %v1583_v19 = vpop.f32.mrf.mxu0 }
 0x222   : > { %v516_v20 = vpop.f32.mrf.mxu0 }
 0x224   : > { %v1584_v21 = vpop.f32.mrf.mxu0 }
 0x226   : > { %v561_v22 = vpop.f32.mrf.mxu0 }
 0x227   : > { %v571_v23 = vsel %vm567_vm3, %v561_v22, -inf }
 0x228   : > { %572 = vmax.xlane.f32.xlu1 %v571_v23  ;;  %v1589_v24 = vpop.f32.mrf.mxu0 }
 0x22a   : > { %v564_v25 = vpop.f32.mrf.mxu0 }
 0x22c   : > { %v1590_v26 = vpop.f32.mrf.mxu0 }
 0x239   : > { %592 = vrot.lane.b32.xlu1 %v2003_v8, %s1865_s12 }
 0x23d   : > { %641 = vrot.lane.b32.xlu1 %v2006_v12, %s1865_s12 }
 0x241   : > { %694 = vrot.lane.b32.xlu1 %v2003_v8, %s1866_s13 }
 0x2a9   : > { %v570_v27 = vpop.xlane.xlu1 %569 }
 0x2aa   : > { %v574_v28 = vsub.f32 %v513_v17, %v570_v27 }
 0x2ac   : > { %v576_v29 = vmul.f32 1.442695, %v574_v28 }
 0x2ae   : > { %1776 = vpow2.f32 %v576_v29 }
 0x2b1   : > { %v573_v30 = vpop.xlane.xlu1 %572 }
 0x2b2   : > { %v575_v31 = vsub.f32 %v561_v22, %v573_v30 }
 0x2b4   : > { %v578_v32 = vmul.f32 1.442695, %v575_v31 }
 0x2b5   : > { %v593_v33 = vpop.permute.xlu1 %592 }
 0x2b6   : > { %1778 = vpow2.f32 %v578_v32  ;;  %v599_v34 = vsel %vm597_vm4, %v593_v33, 0  ;;  %v1750_v32 = vld [vmem:[%s2244_s3] sm:$0xff]  }
 0x2b7   : > { %1592 = vmatpush3.bf16.msra.mxu1 %v599_v34  ;;  %v1751_v34 = vld [vmem:[%s2244_s3 + $0x8] sm:$0xff]  }
 0x2b8   : > { %1603 = vmatprep.subr.bf16.mxu1 %v1862_v1 }
 0x2b9   : > { %v642_v35 = vpop.permute.xlu1 %641 }
 0x2ba   : > { %v647_v36 = vsel %vm597_vm4, %v642_v35, 0 }
 0x2bb   : > { %v1777_v37 = vpop.eup %1776  ;;  %1598 = vmatpush3.bf16.msra.mxu0 %v647_v36 }
 0x2bc   : > { %v580_v38 = vsel %vm567_vm3, %v1777_v37, 0.0  ;;  %1609 = vmatprep.subr.bf16.mxu0 %v1862_v1 }
 0x2bd   : > { %581 = vadd.xlane.f32.xlu0 %v580_v38  ;;  %v695_v42 = vpop.permute.xlu1 %694 }
 0x2be   : > { %v700_v47 = vsel %vm472_vm2, %v695_v42, 0 }
 0x2c3   : > { %v1779_v39 = vpop.eup %1778 }
 0x2c4   : > { %v583_v40 = vsel %vm567_vm3, %v1779_v39, 0.0 }
 0x2c5   : > { %584 = vadd.xlane.f32.xlu1 %v583_v40  ;;  %v1752_v40 = vld [vmem:[%s2246_s5 + $0x38] sm:$0xff]  }
 0x2d3   : > { %692 = vrot.lane.b32.xlu0 %v2003_v8, %s1867_s14 }
 0x2d6   : > { %744 = vrot.lane.b32.xlu1 %v2006_v12, %s1866_s13  ;;  %s2197_s13 = scalar_lea.hbm %s2252_s11, %s1520_s24 }
 0x2da   : > { %742 = vrot.lane.b32.xlu1 %v2006_v12, %s1867_s14  ;;  %s2201_s14 = scalar_lea.sflag [#allocation3], %s378_s16 }
 0x346   : > { %v582_v41 = vpop.xlane.xlu0 %581 }
 0x347   : > { %1780 = vrcp.f32 %v582_v41 }
 0x34a   : > { %v693_v52 = vpop.permute.xlu0 %692 }
 0x34e   : > { %v585_v43 = vpop.xlane.xlu1 %584 }
 0x34f   : > { %1782 = vrcp.f32 %v585_v43 }
 0x352   : > { %v745_v50 = vpop.permute.xlu1 %744 }
 0x353   : > { %v750_v53 = vsel %vm472_vm2, %v745_v50, 0  ;;  %v1755_v50 = vld [vmem:[%s2246_s5 + $0x20] sm:$0xff]  }
 0x354   : > { %v1781_v44 = vpop.eup %1780 }
 0x355   : > { %v588_v45 = vmul.f32 %v1781_v44, %v1777_v37  ;;  %v1753_v44 = vld [vmem:[%s2246_s5 + $0x30] sm:$0xff]  }
 0x356   : > { %v743_v54 = vpop.permute.xlu1 %742 }
 0x357   : > { %v590_v46 = vpack.c.bf16 %v588_v45, %v588_v45 }
 0x359   : > { %1594 = vmatmul.mubr.msk.bf16.vlgmr.msra.gmra.mxu1 %vm567_vm3, %v590_v46 }
 0x35a   : > { %1604 = vmatpush3.bf16.xpose.msra.mxu1 %v700_v47  ;;  %1605 = vmatprep.mubr.msk.bf16.mxu1 %vm1863_vm0, %v1862_v1  ;;  %v1754_v47 = vld [vmem:[%s2246_s5 + $0x28] sm:$0xff]  }
 0x35b   : > { %1615 = vmatprep.subr.bf16.mxu1 %v1862_v1 }
 0x35c   : > { %v1783_v48 = vpop.eup %1782 }
 0x35d   : > { %v589_v49 = vmul.f32 %v1783_v48, %v1779_v39 }
 0x35f   : > { %v591_v51 = vpack.c.bf16 %v589_v49, %v589_v49 }
 0x361   : > { %1600 = vmatmul.mubr.msk.bf16.vlgmr.msra.gmra.mxu0 %vm567_vm3, %v591_v51  ;;  %1606 = vmatmul.mubr.msk.bf16.vlgmr.msra.gmra.mxu1 %vm472_vm2, %v693_v52  ;;  %v1756_v52 = vld [vmem:[%s2246_s5 + $0x18] sm:$0xff]  }
 0x362   : > { %1610 = vmatpush3.bf16.xpose.msra.mxu0 %v750_v53  ;;  %1611 = vmatprep.mubr.msk.bf16.mxu0 %vm1863_vm0, %v1862_v1  ;;  %v1757_v53 = vld [vmem:[%s2246_s5 + $0x10] sm:$0xff]  }
 0x363   : > { %1621 = vmatprep.subr.bf16.mxu0 %v1862_v1  ;;  %1617 = vmatprep.mubr.msk.bf16.mxu1 %vm1863_vm0, %v1862_v1 }
 0x369   : > { %1612 = vmatmul.mubr.msk.bf16.vlgmr.msra.gmra.mxu0 %vm472_vm2, %v743_v54  ;;  %v1758_v54 = vld [vmem:[%s2246_s5 + $0x8] sm:$0xff]  }
 0x36a   : > { %1623 = vmatprep.mubr.msk.bf16.mxu0 %vm1863_vm0, %v1862_v1 }
 0x419   : > { %v2051_v55 = vpop.f32.mrf.mxu1 }
 0x41b   : > { %v1595_v56 = vpop.f32.mrf.mxu1 }
 0x41c   : > { %v1760_v56 = vld [vmem:[%s2248_s7 + $0x38] sm:$0xff]  }
 0x41d   : > { %v638_v57 = vpop.f32.mrf.mxu1 }
 0x41e   : > { %v1761_v57 = vld [vmem:[%s2248_s7 + $0x30] sm:$0xff]  }
 0x41f   : > { %v1596_v58 = vpop.f32.mrf.mxu1 }
 0x420   : > { %v1762_v58 = vld [vmem:[%s2248_s7 + $0x28] sm:$0xff]  }
 0x421   : > { %v683_v59 = vpop.f32.mrf.mxu0  ;;  %v736_v60 = vpop.f32.mrf.mxu1 }
 0x422   : > { %v689_v61 = vpack.c.bf16 %v683_v59, %v2051_v55  ;;  %v792_v62 = vsel %vm567_vm3, %v736_v60, -inf  ;;  %v1759_v55 = vld [vmem:[%s2246_s5] sm:$0xff]  }
 0x423   : > { %793 = vmax.xlane.f32.xlu1 %v792_v62  ;;  %v1601_v63 = vpop.f32.mrf.mxu0  ;;  %v1607_v0 = vpop.f32.mrf.mxu1  ;;  %v1763_v59 = vld [vmem:[%s2248_s7 + $0x20] sm:$0xff]  }
 0x424   : > { %v1483_v0 = vld [vmem:[%s2245_s4] ss:$0 sm:$0xff] }
 0x425   : > { %v686_v2 = vpop.f32.mrf.mxu0  ;;  %v739_v3 = vpop.f32.mrf.mxu1 }
 0x427   : > { %v1602_v4 = vpop.f32.mrf.mxu0  ;;  %v1608_v5 = vpop.f32.mrf.mxu1 }
 0x429   : > { %v786_v6 = vpop.f32.mrf.mxu0 }
 0x42a   : > { %v795_v7 = vsel %vm567_vm3, %v786_v6, -inf }
 0x42b   : > { %796 = vmax.xlane.f32.xlu0 %v795_v7  ;;  %v1613_v9 = vpop.f32.mrf.mxu0 }
 0x42c   : > { %v1765_v9 = vld [vmem:[%s2248_s7 + $0x10] sm:$0xff]  }
 0x42d   : > { %v789_v10 = vpop.f32.mrf.mxu0 }
 0x42e   : > { %v1766_v10 = vld [vmem:[%s2248_s7 + $0x8] sm:$0xff]  }
 0x42f   : > { %v1614_v11 = vpop.f32.mrf.mxu0 }
 0x430   : > { %v1767_v11 = vld [vmem:[%s2248_s7] sm:$0xff]  }
 0x441   : > { %864 = vrot.lane.b32.xlu0 %v2006_v12, %s1868_s15 }
 0x4ac   : > { %v794_v13 = vpop.xlane.xlu1 %793 }
 0x4ad   : > { %v798_v14 = vsub.f32 %v736_v60, %v794_v13  ;;  %v1764_v60 = vld [vmem:[%s2248_s7 + $0x18] sm:$0xff]  }
 0x4ae   : > { %v1768_v13 = vld [vmem:[%s2250_s9 + $0x38] sm:$0xff]  }
 0x4af   : > { %v800_v15 = vmul.f32 1.442695, %v798_v14  ;;  %v1769_v14 = vld [vmem:[%s2250_s9 + $0x30] sm:$0xff]  }
 0x4b1   : > { %1784 = vpow2.f32 %v800_v15  ;;  %v1770_v15 = vld [vmem:[%s2250_s9 + $0x28] sm:$0xff]  }
 0x4b4   : > { %v797_v16 = vpop.xlane.xlu0 %796 }
 0x4b5   : > { %v799_v17 = vsub.f32 %v786_v6, %v797_v16  ;;  %v1771_v16 = vld [vmem:[%s2250_s9 + $0x20] sm:$0xff]  }
 0x4b7   : > { %v802_v18 = vmul.f32 1.442695, %v799_v17  ;;  %v1772_v17 = vld [vmem:[%s2250_s9 + $0x18] sm:$0xff]  }
 0x4b8   : > { %v865_v19 = vpop.permute.xlu0 %864 }
 0x4b9   : > { %1786 = vpow2.f32 %v802_v18  ;;  %v870_v20 = vsel %vm597_vm4, %v865_v19, 0  ;;  %v1484_v18 = vld [vmem:[%s2247_s6] ss:$0 sm:$0xff] }
 0x4ba   : > { %1622 = vmatpush3.bf16.msra.mxu0 %v870_v20 }
 0x4bb   : > { %1633 = vmatprep.subr.bf16.mxu0 %v1862_v1 }
 0x4be   : > { %v1785_v21 = vpop.eup %1784 }
 0x4bf   : > { %v804_v22 = vsel %vm567_vm3, %v1785_v21, 0.0 }
 0x4c0   : > { %805 = vadd.xlane.f32.xlu1 %v804_v22 }
 0x4c6   : > { %v1787_v23 = vpop.eup %1786 }
 0x4c7   : > { %v807_v12 = vsel %vm567_vm3, %v1787_v23, 0.0 }
 0x4c8   : > { %808 = vadd.xlane.f32.xlu1 %v807_v12 }
 0x4d9   : > { %816 = vrot.lane.b32.xlu1 %v2003_v8, %s1868_s15  ;;  %s1800_s15 = scalar_lea.vmem %s2199_s29, 256 }
 0x4da   : > { %p1801_p11 = scmp.ne.s32.totalorder %s2199_s29, %s1800_s15  ;;  %p1808_p1 = scmp.lt.s32.totalorder %s1806_s30, %s1800_s15 }
 0x4dc   : > { %p1802_p12 = pnand %p1801_p11, %p1970_p5  ;;  %p1809_p2 = por %p1808_p1, %p1807_p0 }
 0x4de   : > { %p1803_p13 = pneg %p1802_p12 }
 0x4e0   : > { %p1810_p3 = pnand %p1809_p2, %p1803_p13 }
 0x549   : > { %v806_v24 = vpop.xlane.xlu1 %805 }
 0x54a   : > { %1788 = vrcp.f32 %v806_v24 }
 0x551   : > { %v809_v25 = vpop.xlane.xlu1 %808 }
 0x552   : > { %1790 = vrcp.f32 %v809_v25 }
 0x555   : > { %v817_v26 = vpop.permute.xlu1 %816 }
 0x556   : > { %v822_v27 = vsel %vm597_vm4, %v817_v26, 0 }
 0x557   : > { %v1789_v28 = vpop.eup %1788  ;;  %1616 = vmatpush3.bf16.msra.mxu1 %v822_v27  ;;  %v1773_v27 = vld [vmem:[%s2250_s9 + $0x10] sm:$0xff]  }
 0x558   : > { %v812_v29 = vmul.f32 %v1789_v28, %v1785_v21  ;;  %1627 = vmatprep.subr.bf16.mxu1 %v1862_v1  ;;  %v1774_v28 = vld [vmem:[%s2250_s9 + $0x8] sm:$0xff]  }
 0x55a   : > { %v814_v30 = vpack.c.bf16 %v812_v29, %v812_v29  ;;  %v1775_v29 = vld [vmem:[%s2250_s9] sm:$0xff]  }
 0x55c   : > { %1618 = vmatmul.mubr.msk.bf16.vlgmr.msra.gmra.mxu1 %vm567_vm3, %v814_v30  ;;  %v1493_v30 = vld [vmem:[%s2249_s8] ss:$0 sm:$0xff] }
 0x55d   : > { %1629 = vmatprep.mubr.msk.bf16.mxu1 %vm1863_vm0, %v1862_v1  ;;  %1628 = vmatpush3.bf16.msra.mxu1 %v1751_v34 }
 0x55e   : > { %1639 = vmatprep.subr.bf16.mxu1 %v1862_v1 }
 0x55f   : > { %v1791_v31 = vpop.eup %1790 }
 0x560   : > { %v813_v8 = vmul.f32 %v1791_v31, %v1787_v23 }
 0x562   : > { %v815_v33 = vpack.c.bf16 %v813_v8, %v813_v8 }
 0x564   : > { %1624 = vmatmul.mubr.msk.bf16.vlgmr.msra.gmra.mxu0 %vm567_vm3, %v815_v33 }
 0x565   : > { %1634 = vmatpush3.bf16.msra.mxu0 %v1750_v32  ;;  %1635 = vmatprep.mubr.msk.bf16.mxu0 %vm1863_vm0, %v1862_v1 }
 0x566   : > { %1659 = vmatprep.subr.bf16.mxu0 %v1862_v1 }
 0x56c   : > { %1636 = vmatmul.mubr.msk.bf16.vlgmr.msra.gmra.mxu0 %vm472_vm2, %v689_v61 }
 0x56d   : > { %1675 = vmatprep.mubr.msk.bf16.mxu0 %vm1863_vm0, %v1862_v1  ;;  %1660 = vmatpush3.bf16.msra.mxu0 %v1760_v56 }
 0x56e   : > { %1661 = vmatprep.subr.bf16.mxu0 %v1862_v1 }
 0x571   : > { %1662 = vmatpush3.bf16.msra.mxu0 %v1761_v57 }
 0x572   : > { %1663 = vmatprep.subr.bf16.mxu0 %v1862_v1 }
 0x575   : > { %1664 = vmatpush3.bf16.msra.mxu0 %v1762_v58 }
 0x576   : > { %1665 = vmatprep.subr.bf16.mxu0 %v1862_v1 }
 0x579   : > { %1666 = vmatpush3.bf16.msra.mxu0 %v1763_v59 }
 0x57a   : > { %1667 = vmatprep.subr.bf16.mxu0 %v1862_v1 }
 0x57d   : > { %1668 = vmatpush3.bf16.msra.mxu0 %v1764_v60 }
 0x57e   : > { %1669 = vmatprep.subr.bf16.mxu0 %v1862_v1 }
 0x581   : > { %1670 = vmatpush3.bf16.msra.mxu0 %v1765_v9 }
 0x582   : > { %1671 = vmatprep.subr.bf16.mxu0 %v1862_v1 }
 0x585   : > { %1672 = vmatpush3.bf16.msra.mxu0 %v1766_v10 }
 0x586   : > { %1673 = vmatprep.subr.bf16.mxu0 %v1862_v1 }
 0x589   : > { %1674 = vmatpush3.bf16.msra.mxu0 %v1767_v11 }
 0x61c   : > { %v858_v35 = vpop.f32.mrf.mxu1 }
 0x61e   : > { %v1619_v36 = vpop.f32.mrf.mxu1 }
 0x620   : > { %v861_v37 = vpop.f32.mrf.mxu1 }
 0x622   : > { %v1620_v38 = vpop.f32.mrf.mxu1 }
 0x624   : > { %v906_v39 = vpop.f32.mrf.mxu0 }
 0x625   : > { %v912_v41 = vpack.c.bf16 %v906_v39, %v858_v35 }
 0x626   : > { %v1625_v42 = vpop.f32.mrf.mxu0 }
 0x627   : > { %1630 = vmatmul.mubr.msk.bf16.vlgmr.msra.gmra.mxu1 %vm472_vm2, %v912_v41 }
 0x628   : > { %v909_v43 = vpop.f32.mrf.mxu0  ;;  %1640 = vmatpush3.bf16.msra.mxu1 %v1752_v40  ;;  %1655 = vmatprep.mubr.msk.bf16.mxu1 %vm1863_vm0, %v1862_v1 }
 0x629   : > { %1641 = vmatprep.subr.bf16.mxu1 %v1862_v1 }
 0x62a   : > { %v1626_v45 = vpop.f32.mrf.mxu0 }
 0x62c   : > { %v1008_v46 = vpop.f32.mrf.mxu0  ;;  %1642 = vmatpush3.bf16.msra.mxu1 %v1753_v44 }
 0x62d   : > { %1643 = vmatprep.subr.bf16.mxu1 %v1862_v1 }
 0x62e   : > { %v1637_v48 = vpop.f32.mrf.mxu0 }
 0x630   : > { %v1011_v49 = vpop.f32.mrf.mxu0  ;;  %1644 = vmatpush3.bf16.msra.mxu1 %v1754_v47 }
 0x631   : > { %1645 = vmatprep.subr.bf16.mxu1 %v1862_v1 }
 0x632   : > { %v1638_v51 = vpop.f32.mrf.mxu0 }
 0x634   : > { %1646 = vmatpush3.bf16.msra.mxu1 %v1755_v50 }
 0x635   : > { %1647 = vmatprep.subr.bf16.mxu1 %v1862_v1 }
 0x638   : > { %1648 = vmatpush3.bf16.msra.mxu1 %v1756_v52 }
 0x639   : > { %1649 = vmatprep.subr.bf16.mxu1 %v1862_v1 }
 0x63c   : > { %1650 = vmatpush3.bf16.msra.mxu1 %v1757_v53 }
 0x63d   : > { %1651 = vmatprep.subr.bf16.mxu1 %v1862_v1 }
 0x640   : > { %1652 = vmatpush3.bf16.msra.mxu1 %v1758_v54 }
 0x641   : > { %1653 = vmatprep.subr.bf16.mxu1 %v1862_v1 }
 0x644   : > { %1654 = vmatpush3.bf16.msra.mxu1 %v1759_v55 }
 0x645   : > { %1679 = vmatprep.subr.bf16.mxu1 %v1862_v1 }
 0x6e7   : > { %v958_v61 = vpop.f32.mrf.mxu1 }
 0x6e8   : > { %v1009_v63 = vadd.f32 %v1008_v46, %v958_v61 }
 0x6e9   : > { %v1631_v62 = vpop.f32.mrf.mxu1 }
 0x6ea   : > { %v1022_v5 = vadd.f32 %v1483_v0, %v1009_v63 }
 0x6eb   : > { %v961_v2 = vpop.f32.mrf.mxu1 }
 0x6ec   : > { %v1012_v3 = vadd.f32 %v1011_v49, %v961_v2 }
 0x6ed   : > { %v1632_v4 = vpop.f32.mrf.mxu1 }
 0x6ee   : > { %v1023_v6 = vadd.f32 %v1483_v0, %v1012_v3 }
 0x6f0   : > { %v1024_v7 = vpack.c.bf16 %v1023_v6, %v1022_v5 }
 0x6f2   : > { %1656 = vmatmul.mubr.bf16.vlgmr.msra.gmra.mxu1 %v1024_v7 }
 0x6f3   : > { %1695 = vmatprep.mubr.msk.bf16.mxu1 %vm1863_vm0, %v1862_v1  ;;  %1680 = vmatpush3.bf16.msra.mxu1 %v1768_v13 }
 0x6f4   : > { %1681 = vmatprep.subr.bf16.mxu1 %v1862_v1 }
 0x6f7   : > { %1682 = vmatpush3.bf16.msra.mxu1 %v1769_v14 }
 0x6f8   : > { %1683 = vmatprep.subr.bf16.mxu1 %v1862_v1 }
 0x6fb   : > { %1684 = vmatpush3.bf16.msra.mxu1 %v1770_v15 }
 0x6fc   : > { %1685 = vmatprep.subr.bf16.mxu1 %v1862_v1 }
 0x6ff   : > { %1686 = vmatpush3.bf16.msra.mxu1 %v1771_v16 }
 0x700   : > { %1687 = vmatprep.subr.bf16.mxu1 %v1862_v1 }
 0x703   : > { %1688 = vmatpush3.bf16.msra.mxu1 %v1772_v17 }
 0x704   : > { %1689 = vmatprep.subr.bf16.mxu1 %v1862_v1 }
 0x707   : > { %1690 = vmatpush3.bf16.msra.mxu1 %v1773_v27 }
 0x708   : > { %1691 = vmatprep.subr.bf16.mxu1 %v1862_v1 }
 0x70b   : > { %1692 = vmatpush3.bf16.msra.mxu1 %v1774_v28 }
 0x70c   : > { %1693 = vmatprep.subr.bf16.mxu1 %v1862_v1  ;;  %v1502_v1 = vld [vmem:[%s2251_s10] ss:$0 sm:$0xff] }
 0x70f   : > { %1694 = vmatpush3.bf16.msra.mxu1 %v1775_v29 }
 0x7b2   : > { %v1130_v19 = vpop.f32.mrf.mxu1 }
 0x7b3   : > { %v1131_v21 = vadd.f32 %v1484_v18, %v1130_v19 }
 0x7b4   : > { %v1657_v20 = vpop.f32.mrf.mxu1 }
 0x7b5   : > { %v1137_v24 = vmax.f32 %v1131_v21, 0.0 }
 0x7b6   : > { %v1133_v22 = vpop.f32.mrf.mxu1 }
 0x7b7   : > { %v1134_v23 = vadd.f32 %v1484_v18, %v1133_v22 }
 0x7b8   : > { %v1658_v12 = vpop.f32.mrf.mxu1 }
 0x7b9   : > { %v1138_v25 = vmax.f32 %v1134_v23, 0.0 }
 0x7bb   : > { %v1139_v26 = vpack.c.bf16 %v1138_v25, %v1137_v24 }
 0x7bd   : > { %1676 = vmatmul.mubr.bf16.vlgmr.msra.gmra.mxu0 %v1139_v26 }
 0x87d   : > { %v1245_v31 = vpop.f32.mrf.mxu0 }
 0x87e   : > { %v1246_v32 = vadd.f32 %v1493_v30, %v1245_v31 }
 0x87f   : > { %v1677_v8 = vpop.f32.mrf.mxu0 }
 0x880   : > { %v1252_v36 = vmax.f32 %v1246_v32, 0.0 }
 0x881   : > { %v1248_v33 = vpop.f32.mrf.mxu0 }
 0x882   : > { %v1249_v34 = vadd.f32 %v1493_v30, %v1248_v33 }
 0x883   : > { %v1678_v35 = vpop.f32.mrf.mxu0 }
 0x884   : > { %v1253_v37 = vmax.f32 %v1249_v34, 0.0 }
 0x886   : > { %v1254_v38 = vpack.c.bf16 %v1253_v37, %v1252_v36 }
 0x888   : > { %1696 = vmatmul.mubr.bf16.vlgmr.msra.gmra.mxu1 %v1254_v38 }
 0x948   : > { %v1360_v39 = vpop.f32.mrf.mxu1 }
 0x949   : > { %v1361_v40 = vadd.f32 %v1502_v1, %v1360_v39 }
 0x94a   : > { %v1697_v41 = vpop.f32.mrf.mxu1 }
 0x94b   : > { %v1511_v42 = vmul.f32 -1.442695, %v1361_v40 }
 0x94c   : > { %v1363_v43 = vpop.f32.mrf.mxu1 }
 0x94d   : > { %1792 = vpow2.f32 %v1511_v42  ;;  %v1364_v44 = vadd.f32 %v1502_v1, %v1363_v43 }
 0x94e   : > { %v1698_v45 = vpop.f32.mrf.mxu1 }
 0x94f   : > { %v1512_v46 = vmul.f32 -1.442695, %v1364_v44 }
 0x951   : > { %1794 = vpow2.f32 %v1512_v46 }
 0x95a   : > { %v1793_v47 = vpop.eup %1792 }
 0x95b   : > { %v1373_v48 = vadd.f32 1.0, %v1793_v47 }
 0x95d   : > { %1796 = vrcp.f32 %v1373_v48 }
 0x95e   : > { %v1795_v49 = vpop.eup %1794 }
 0x95f   : > { %v1374_v50 = vadd.f32 1.0, %v1795_v49 }
 0x961   : > { %1798 = vrcp.f32 %v1374_v50 }
 0x96a   : > { %v1797_v51 = vpop.eup %1796 }
 0x96b   : > { %1379 = vst [vmem:[%s380_s25] sm:$0xff] %v1797_v51 }
 0x96e   : > { %v1799_v52 = vpop.eup %1798 }
 0x96f   : > { %1380 = vst [vmem:[%s380_s25 + $0x8] sm:$0xff] %v1799_v52 }
 0x970   : > { %1813 = shalt.err (!%p1810_p3)
}
 0x971   : > { %s1814_s16 = scalar_lea.hbm %s2197_s13, 256  ;;  %s1818_s12 = scalar_lea.hbm %s2252_s11, 512 }
 0x972   : > { %p1815_p4 = scmp.ne.s32.totalorder %s2197_s13, %s1814_s16  ;;  %p1819_p9 = scmp.lt.s32.totalorder %s2197_s13, %s2252_s11 }
 0x973   : > { %p1820_p10 = scmp.lt.s32.totalorder %s1818_s12, %s1814_s16 }
 0x974   : > { %p1816_p7 = pnand %p1815_p4, %p1970_p5 }
 0x975   : > { %p1821_p11 = por %p1820_p10, %p1819_p9 }
 0x976   : > { %p1817_p8 = pneg %p1816_p7 }
 0x978   : > { %p1822_p12 = pnand %p1821_p11, %p1817_p8 }
 0x97a   : > { %1825 = shalt.err (!%p1822_p12)
}
 0x97b   : > { %s1870_s15 = smov 128   ;;  %s1871_s22 = smov 8  }
 0x97c   : > { %1699 = dma.vmem_to_hbm [thread:$0]  (%p1970_p5), %s2199_s29, 256, %s2197_s13, %s2201_s14, %s1870_s15, %s1870_s15, %s1871_s22  }
 0x97d PF: > { %p1705_p13 = scmp.ge.s32.totalorder %s1860_s20, 2  ;;  %s1410_s30 = sand.u32 1, %s1848_s17  }
 0x97e   : > { %s1411_s0 = scalar_lea.sflag [#allocation3], %s1410_s30 }
 0x97f   : > { %p1702_p0 = pnand %p1705_p13, %p1974_p6 }
 0x981   : > { %p1703_p1 = pneg %p1702_p0 }
 0x983   : > { %1843 = dma.done.wait (%p1703_p1), %s1411_s0, 256  }
 0x984   : > { %1845 = vsyncadd (%p1703_p1), %s1411_s0, 4294967040  ;;  %p21_p2 = scmp.ge.s32.totalorder %s1957_s23, 4   ;;  %s2257_s17 = smov %s1852_s18 }
 0x985   : > { %s2258_s18 = smov %s1856_s19  ;;  %s2259_s19 = smov %s1968_s26 }
 0x986   : > { %s2260_s20 = smov %s1957_s23  ;;  %23 = sbr.rel (!%p21_p2) target bundleno = 5 (0x5), region = 99 }
 0x98b   :  { %1416 = vsyncpa [#allocation3], 1 }
 0x98c   :  { %1418 = vsyncpa [#allocation3 + $0x1], 1 }

</bundles_post_ra>
